<compile_context>
chip_gen: v5e
topology: v5e:2x2
jax: 0.10.0
libtpu: 0.0.40
codegen_flags: <defaults>
</compile_context>

<pallas_src>
import functools

import jax
import jax.numpy as jnp
import numpy as np
from jax.experimental import pallas as pl
from jax.experimental.pallas import tpu as pltpu


def build_pe(d_model: int, max_len: int = 1000, dtype=jnp.float32) -> jnp.ndarray:
    """Positional-encoding buffer, numerically identical to the torch __init__.

    Returned as (max_len, d_model) in the model dtype so the jitted forward does no
    squeeze / cast HLOs (review item: hoist layout/dtype prep out of the hot path).
    """
    assert d_model % 2 == 0, "d_model must be even (same limitation as the torch module)"
    position = np.arange(0, max_len, dtype=np.float32)[:, None]               # (max_len, 1)
    div_term = np.exp(np.arange(0, d_model, 2, dtype=np.float32)
                      * (-np.log(10000.0) / d_model))                         # (d_model/2,)
    pe = np.zeros((max_len, d_model), dtype=np.float32)
    pe[:, 0::2] = np.sin(position * div_term)
    pe[:, 1::2] = np.cos(position * div_term)
    return jnp.asarray(pe, dtype=dtype)                                       # (max_len, d_model)


def _round_up(x: int, m: int) -> int:
    return -(-x // m) * m


def _vmem_budget_bytes() -> int:
    """Generation-aware tile budget: ~1/2 of per-core VMEM, capped at 64 MiB.

    v7x (64 MiB/TC)  -> 32 MiB;  v5e/v6e (128 MiB) -> 64 MiB.
    """
    try:
        cap = int(pltpu.get_tpu_info().vmem_capacity_bytes)
    except Exception:
        cap = 64 << 20          # conservative fallback (v7x per-TC size)
    return min(cap // 2, 64 << 20)


def _add_pe_3d_kernel(x_ref, pe_ref, o_ref):
    """x_ref/o_ref: (tile_s, B, D); pe_ref: (tile_s, D).  Used when B fills sublanes."""
    o_ref[...] = x_ref[...] + pe_ref[...][:, None, :]


def _add_pe_flat_kernel(x_ref, pe_ref, o_ref, *, batch: int):
    """x_ref/o_ref: (tile_s*B, D) flattened rows; pe_ref: (tile_s, D).

    Each pe row is repeated `batch` times along the sublane axis so the add is a plain
    elementwise op on a sublane-dense block (no 8-16x padding waste for tiny B).
    """
    pe_blk = pe_ref[...]
    if batch > 1:
        pe_blk = jnp.repeat(pe_blk, batch, axis=0)        # (tile_s*B, D), cheap under HBM-bound
    o_ref[...] = x_ref[...] + pe_blk


@jax.jit
def positional_encoding_forward(x: jnp.ndarray, pe2d: jnp.ndarray) -> jnp.ndarray:
    """x: (S, B, D); pe2d: (max_len, D).  Returns x + pe2d[:S] broadcast over batch."""
    S, B, D = x.shape
    max_len, d_pe = pe2d.shape
    if d_pe != D:
        raise ValueError(f"d_model mismatch: x has {D}, pe has {d_pe}")
    if S > max_len:
        raise ValueError(f"seq_len={S} exceeds positional-encoding max_len={max_len}")
    if pe2d.dtype != x.dtype:
        pe2d = pe2d.astype(x.dtype)      # no-op when pe was built in the model dtype

    itemsize = jnp.dtype(x.dtype).itemsize
    sub = max(8, 32 // itemsize)         # sublane granularity: 8 f32 / 16 bf16 / 32 int8
    d_pad = _round_up(D, 128)            # lane padding (per row, unavoidable for D<128)

    # Small-shape layout path: flatten (S, B, D) -> (S*B, D) so tiny B does not waste
    # sublanes.  The reshape is a free contiguous view; the inverse reshape is free too.
    flatten = (B < sub) or (D % 128 != 0)

    # --- tile sizing: pure HBM streaming; big tiles inside a generation-aware budget. ---
    pe_row_bytes = d_pad * itemsize                               # 1 seq position of pe
    if flatten:
        row_bytes = B * d_pad * itemsize                          # 1 seq position of x (dense rows)
    else:
        row_bytes = _round_up(B, sub) * d_pad * itemsize          # 1 seq position of x (3-D block)
    # x-in + out double-buffered (4x) + pe double-buffered (2x); flatten path also
    # materializes the repeated pe block once per step (+1 row_bytes).
    per_seq = 4 * row_bytes + 2 * pe_row_bytes + (row_bytes if (flatten and B > 1) else 0)

    budget = _vmem_budget_bytes()
    s_cap = _round_up(S, sub)
    tile_s = max(sub, (budget // per_seq) // sub * sub)
    tile_s = min(tile_s, s_cap)
    # Guarantee >= 2 grid steps whenever S allows, so both v7x TensorCores get work
    # (harmless on single-TC v5e/v6e: tiles stay far above the ~512-row roofline plateau).
    if s_cap > sub:
        tile_s = min(tile_s, max(sub, _round_up(pl.cdiv(S, 2), sub)))
    num_tiles = pl.cdiv(S, tile_s)

    vmem_needed = tile_s * per_seq
    vmem_limit = int(min(budget + (8 << 20), max(16 << 20, vmem_needed + (4 << 20))))

    pe_spec = pl.BlockSpec((tile_s, D), lambda i: (i, 0))        # streamed; each row DMA'd once

    if flatten:
        x_in = x.reshape(S * B, D)                               # free view
        kernel = functools.partial(_add_pe_flat_kernel, batch=B)
        in_specs = [pl.BlockSpec((tile_s * B, D), lambda i: (i, 0)), pe_spec]
        out_spec = pl.BlockSpec((tile_s * B, D), lambda i: (i, 0))
        out_shape = jax.ShapeDtypeStruct((S * B, D), x.dtype)
    else:
        x_in = x
        kernel = _add_pe_3d_kernel
        in_specs = [pl.BlockSpec((tile_s, B, D), lambda i: (i, 0, 0)), pe_spec]
        out_spec = pl.BlockSpec((tile_s, B, D), lambda i: (i, 0, 0))
        out_shape = jax.ShapeDtypeStruct((S, B, D), x.dtype)

    out = pl.pallas_call(
        kernel,
        out_shape=out_shape,
        grid_spec=pltpu.PrefetchScalarGridSpec(
            num_scalar_prefetch=0,
            grid=(num_tiles,),
            in_specs=in_specs,
            out_specs=out_spec,
        ),
        compiler_params=pltpu.CompilerParams(
            dimension_semantics=("parallel",),    # shards the stream across both TCs on v7x
            vmem_limit_bytes=vmem_limit,
        ),
    )(x_in, pe2d)

    if flatten:
        out = out.reshape(S, B, D)                               # free view
    return out


if __name__ == "__main__":
    # Small shapes consistent with the module: seq=8, batch=2, d_model=32.
    S, B, D = 8, 2, 32
    max_len = 1000

    key = jax.random.PRNGKey(0)
    x = jax.random.normal(key, (S, B, D), dtype=jnp.float32)

    pe2d = build_pe(D, max_len, dtype=jnp.float32)               # (max_len, D), torch-identical values

    out = positional_encoding_forward(x, pe2d)
    out = jax.block_until_ready(out)

    # Reference check in plain numpy (matches torch: x + pe[:S] with batch broadcast).
    ref = np.asarray(x) + np.asarray(pe2d)[:S][:, None, :]
    np.testing.assert_allclose(np.asarray(out), ref, rtol=1e-6, atol=1e-6)

    print("KERNEL_OK")
</pallas_src>

<mosaic_0001>
module attributes {stable_mosaic.version = 11 : i64} {
  func.func @_add_pe_flat_kernel(%arg0: i32, %arg1: memref<16x32xf32, #tpu.memory_space<vmem>>, %arg2: memref<8x32xf32, #tpu.memory_space<vmem>>, %arg3: memref<16x32xf32, #tpu.memory_space<vmem>>) attributes {dimension_semantics = [#tpu.dimension_semantics<parallel>], iteration_bounds = array<i64: 1>, scalar_prefetch = 0 : i64, scratch_operands = 0 : i64, tpu.core_type = #tpu.core_type<tc>, window_params = [{transform_indices = @transform_0, window_bounds = array<i64: 16, 32>}, {transform_indices = @transform_1, window_bounds = array<i64: 8, 32>}, {transform_indices = @transform_2, window_bounds = array<i64: 16, 32>}]} {
    %c0 = arith.constant 0 : index
    %c0_0 = arith.constant 0 : index
    %0 = vector.load %arg2[%c0, %c0_0] : memref<8x32xf32, #tpu.memory_space<vmem>>, vector<8x32xf32>
    %1 = vector.shape_cast %0 : vector<8x32xf32> to vector<8x1x32xf32>
    %2 = vector.broadcast %1 : vector<8x1x32xf32> to vector<8x2x32xf32>
    %3 = vector.shape_cast %2 : vector<8x2x32xf32> to vector<16x32xf32>
    %c0_1 = arith.constant 0 : index
    %c0_2 = arith.constant 0 : index
    %4 = vector.load %arg1[%c0_1, %c0_2] : memref<16x32xf32, #tpu.memory_space<vmem>>, vector<16x32xf32>
    %5 = arith.addf %4, %3 : vector<16x32xf32>
    %c0_3 = arith.constant 0 : index
    %c0_4 = arith.constant 0 : index
    %6 = vector.load %arg3[%c0_3, %c0_4] : memref<16x32xf32, #tpu.memory_space<vmem>>, vector<16x32xf32>
    tpu.vector_store %arg3[%c0_3, %c0_4], %5 {strides = array<i32>} : memref<16x32xf32, #tpu.memory_space<vmem>>, vector<16x32xf32>,
    return
  }
  func.func @transform_0(%arg0: i32) -> (i32, i32) {
    %c0_i32 = arith.constant 0 : i32
    %c0_i32_0 = arith.constant 0 : i32
    return %arg0, %c0_i32 : i32, i32
  }
  func.func @transform_1(%arg0: i32) -> (i32, i32) {
    %c0_i32 = arith.constant 0 : i32
    %c0_i32_0 = arith.constant 0 : i32
    return %arg0, %c0_i32 : i32, i32
  }
  func.func @transform_2(%arg0: i32) -> (i32, i32) {
    %c0_i32 = arith.constant 0 : i32
    %c0_i32_0 = arith.constant 0 : i32
    return %arg0, %c0_i32 : i32, i32
  }
}

</mosaic_0001>

<bundles_post_ra>
// kernel: positional_encoding_forward.1
= control target key start
LH: loop header
LB: loop body
LE: loop exit
PB: predicated region body
PF: predicated region fallthrough
CT: control target
= control target key end

     0   :  { %s132_s0 = inlined_call_operand.vmem [shape: f32[16,32], index: 0, kind: input, shape index: {}]   ;;  %s133_s1 = inlined_call_operand.vmem [shape: f32[1000,32], index: 1, kind: input, shape index: {}]   ;;  %s134_s2 = inlined_call_operand.hbm [shape: f32[16,32], index: 2, kind: output, shape index: {}]  }
   0x1   :  { %v12_v0 = vld [vmem:[%s133_s1] sm:$0xff] }
   0x2   :  { %v21_v1 = vperm.slane %v12_v0, 0  ;;  %v14_v2 = vrot.slane %v12_v0, 1  ;;  %v15_v3 = vrot.slane %v12_v0, 2  ;;  %v16_v4 = vrot.slane %v12_v0, 3 }
   0x3   :  { %7 = vsyncpa [#allocation3], 0  ;;  %v17_v5 = vrot.slane %v12_v0, 4  ;;  %v18_v6 = vrot.slane %v12_v0, 5  ;;  %v19_v7 = vrot.slane %v12_v0, 6  ;;  %v20_v11 = vrot.slane %v12_v0, 7 }
   0x4   :  { %31 = vst [vmem:[#allocation1] ss:$4 sm:$0xff] %v21_v1  ;;  %v22_v8 = vperm.slane %v14_v2, 0  ;;  %v23_v9 = vperm.slane %v15_v3, 0  ;;  %v24_v10 = vperm.slane %v16_v4, 0  ;;  %v29_v16 = vld [vmem:[%s132_s0] sm:$0xff] }
   0x5   :  { %v25_v12 = vperm.slane %v17_v5, 0  ;;  %v26_v13 = vperm.slane %v18_v6, 0  ;;  %v27_v14 = vperm.slane %v19_v7, 0  ;;  %v28_v15 = vperm.slane %v20_v11, 0  ;;  %s61_s14 = sshll.u32 %s134_s2, 4  ;;  %v30_v19 = vld [vmem:[%s132_s0 + $0x8] sm:$0xff]  ;;  %s62_s14 = int_to_ptr.hbm [resolvable:$true] %s61_s14 }
   0x6   :  { %33 = vst [vmem:[#allocation1 + $0x1] ss:$4 sm:$0xff] %v22_v8  ;;  %vm52_vm0 = vcmask 261120   ;;  %s102_s17 = smov [#allocation2]   ;;  %s103_s19 = smov 128  }
   0x7   :  { %35 = vst [vmem:[#allocation1 + $0x2] ss:$4 sm:$0xff] %v23_v9  ;;  %s59_s18 = sshll.u32 %s102_s17, 4  ;;  %s104_s20 = smov 8   ;;  %s60_s18 = int_to_ptr.vmem [resolvable:$true] %s59_s18 }
   0x8   :  { %37 = vst [vmem:[#allocation1 + $0x3] ss:$4 sm:$0xff] %v24_v10 }
   0x9   :  { %39 = vst [vmem:[#allocation1 + $0x20] ss:$4 sm:$0xff] %v25_v12 }
   0xa   :  { %41 = vst [vmem:[#allocation1 + $0x21] ss:$4 sm:$0xff] %v26_v13 }
   0xb   :  { %43 = vst [vmem:[#allocation1 + $0x22] ss:$4 sm:$0xff] %v27_v14 }
   0xc   :  { %45 = vst [vmem:[#allocation1 + $0x23] ss:$4 sm:$0xff] %v28_v15 }
   0xf   :  { %v46_v17 = vld.sshfl [vmem:[#allocation1] sm:$0xff pattern:$0x73625140] }
  0x10   :  { %v50_v18 = vadd.f32 %v46_v17, %v29_v16 }
  0x12   :  { %53 = vst.msk [vmem:[#allocation2] sm:$0xff] %vm52_vm0, %v50_v18 }
  0x13   :  { %v47_v20 = vld.sshfl [vmem:[#allocation1 + $0x20] sm:$0xff pattern:$0x73625140] }
  0x14   :  { %v51_v21 = vadd.f32 %v47_v20, %v30_v19 }
  0x16   :  { %54 = vst.msk [vmem:[#allocation2 + $0x8] sm:$0xff] %vm52_vm0, %v51_v21 }
  0x17   :  { %67 = dma.vmem_to_hbm [thread:$0]  %s60_s18, 256, %s62_s14, [#allocation3], %s103_s19, %s103_s19, %s104_s20  }
  0x18   :  { %100 = dma.done.wait [#allocation3], 256  }
  0x19   :  { %101 = vsyncadd [#allocation3], 4294967040 }
  0x1a   :  { %72 = vsyncpa [#allocation3], 1 }

</bundles_post_ra>
